<compile_context>
chip_gen: v6e
topology: v6e:2x2x1
jax: 0.10.0
libtpu: 0.0.40
codegen_flags: <defaults>
</compile_context>

<pallas_src>
import functools

import jax
import jax.numpy as jnp
from jax import lax
from jax.experimental import pallas as pl
from jax.experimental.pallas import tpu as pltpu

_EPS = 1e-12                              # matches ATen cosine_embedding_loss eps
_COMPUTE_CHUNK_BYTES = 2 * 1024 * 1024    # f32 temporaries per compute chunk


def _round_up(x, m):
    return ((x + m - 1) // m) * m


def _choose_tiling(n, d, itemsize, tile_n, chunk_n):
    """Pick (DMA tile rows, compute chunk rows, vmem limit) for this chip."""
    sub = max(8, 32 // itemsize)          # sublane multiple: f32->8, bf16->16, i8->32
    try:
        vmem_cap = pltpu.get_tpu_info().vmem_capacity_bytes
    except Exception:
        vmem_cap = 64 * 1024 * 1024       # conservative fallback (v7x)
    # 2 inputs x 2 pipeline buffers live in this budget; rest is for temps.
    input_budget = (vmem_cap * 3) // 8
    vmem_limit = int(min((vmem_cap * 3) // 4, 100 * 1024 * 1024))

    n_up = _round_up(n, sub)

    # Compute-chunk rows: bound the f32 upcast / product temporaries.
    if chunk_n is None:
        chunk_n = _COMPUTE_CHUNK_BYTES // (d * 4)
    chunk_rows = max(sub, min((int(chunk_n) // sub) * sub, n_up))

    # DMA-tile rows: as large as the pipelining budget allows, in whole chunks.
    if tile_n is None:
        tile_n = input_budget // (4 * d * itemsize)   # 2 inputs x 2 buffers
    tile_rows = max(chunk_rows, (int(tile_n) // chunk_rows) * chunk_rows)
    tile_rows = min(tile_rows, _round_up(n, chunk_rows))
    return tile_rows, chunk_rows, vmem_limit


def _cos_sim_loss_kernel(n_ref, yp_ref, y_ref, o_ref, *, tile_rows, chunk_rows):
    step = pl.program_id(0)

    @pl.when(step == 0)
    def _init():
        o_ref[...] = jnp.zeros_like(o_ref)

    n_valid = n_ref[0]
    row0 = step * tile_rows
    num_chunks = tile_rows // chunk_rows

    def make_body(masked):
        def body(c, carry):
            off = pl.multiple_of(c * chunk_rows, chunk_rows)
            yp = yp_ref[pl.ds(off, chunk_rows), :].astype(jnp.float32)
            yt = y_ref[pl.ds(off, chunk_rows), :].astype(jnp.float32)
            dot = jnp.sum(yp * yt, axis=-1, keepdims=True)          # (chunk, 1)
            m1 = jnp.sum(yp * yp, axis=-1, keepdims=True) + _EPS
            m2 = jnp.sum(yt * yt, axis=-1, keepdims=True) + _EPS
            # rsqrt uses the EUP slot (otherwise idle) instead of a VPU divide.
            cos = dot * lax.rsqrt(m1 * m2)
            one_minus = 1.0 - cos
            if masked:
                rows = row0 + off + lax.broadcasted_iota(
                    jnp.int32, (chunk_rows, 1), 0)
                one_minus = jnp.where(rows < n_valid, one_minus, 0.0)
            return carry + jnp.sum(one_minus)
        return body

    zero = jnp.zeros((), jnp.float32)

    # Full tiles skip the iota/compare/select entirely.
    @pl.when(row0 + tile_rows <= n_valid)
    def _full():
        o_ref[...] += lax.fori_loop(0, num_chunks, make_body(False), zero)

    # Only the trailing partial tile pays the row mask.
    @pl.when(row0 + tile_rows > n_valid)
    def _tail():
        o_ref[...] += lax.fori_loop(0, num_chunks, make_body(True), zero)


def cos_sim_loss(y_pred: jax.Array, y: jax.Array, *, tile_n=None,
                 chunk_n=None) -> jax.Array:
    """JAX/Pallas equivalent of the PyTorch cos_sim_loss module's forward."""
    assert y_pred.shape == y.shape and y_pred.ndim == 2
    n, d = y_pred.shape
    itemsize = max(jnp.dtype(y_pred.dtype).itemsize, jnp.dtype(y.dtype).itemsize)

    tile_rows, chunk_rows, vmem_limit = _choose_tiling(n, d, itemsize,
                                                       tile_n, chunk_n)
    num_tiles = pl.cdiv(n, tile_rows)

    kernel = functools.partial(_cos_sim_loss_kernel,
                               tile_rows=tile_rows, chunk_rows=chunk_rows)

    in_spec = pl.BlockSpec((tile_rows, d), lambda i, n_ref: (i, 0))

    cost = pl.CostEstimate(
        flops=8 * n * d,
        transcendentals=n,
        bytes_accessed=2 * n * d * itemsize + 8 * 128 * 4,
    )

    out = pl.pallas_call(
        kernel,
        out_shape=jax.ShapeDtypeStruct((8, 128), jnp.float32),
        grid_spec=pltpu.PrefetchScalarGridSpec(
            num_scalar_prefetch=1,
            grid=(num_tiles,),
            in_specs=[in_spec, in_spec],
            out_specs=pl.BlockSpec((8, 128), lambda i, n_ref: (0, 0)),
        ),
        compiler_params=pltpu.CompilerParams(
            dimension_semantics=("arbitrary",),
            vmem_limit_bytes=vmem_limit,
        ),
        cost_estimate=cost,
    )(jnp.asarray([n], dtype=jnp.int32), y_pred, y)

    return out[0, 0] / jnp.float32(n)


def _reference(y_pred, y):
    yp = y_pred.astype(jnp.float32)
    yt = y.astype(jnp.float32)
    dot = jnp.sum(yp * yt, axis=-1)
    m1 = jnp.sum(yp * yp, axis=-1) + _EPS
    m2 = jnp.sum(yt * yt, axis=-1) + _EPS
    return jnp.mean(1.0 - dot / jnp.sqrt(m1 * m2))


if __name__ == "__main__":
    key = jax.random.PRNGKey(0)
    k1, k2, k3, k4, k5, k6 = jax.random.split(key, 6)

    # Small (batch, features) case matching CosineEmbeddingLoss inputs;
    # exercises the default tile-sizing path (single exact tile).
    N, D = 8, 32
    yp1 = jax.random.normal(k1, (N, D), dtype=jnp.float32)
    yt1 = jax.random.normal(k2, (N, D), dtype=jnp.float32)
    loss1 = cos_sim_loss(yp1, yt1)
    jax.block_until_ready(loss1)
    ref1 = _reference(yp1, yt1)
    assert jnp.allclose(loss1, ref1, atol=2e-5, rtol=1e-5), (loss1, ref1)

    # Ragged N + multi-tile + multi-chunk + partial trailing block (no padding):
    # forces the full grid / fori-chunk / masked-tail machinery.
    yp2 = jax.random.normal(k3, (200, 256), dtype=jnp.float32)
    yt2 = jax.random.normal(k4, (200, 256), dtype=jnp.float32)
    loss2 = cos_sim_loss(yp2, yt2, tile_n=96, chunk_n=32)
    jax.block_until_ready(loss2)
    ref2 = _reference(yp2, yt2)
    assert jnp.allclose(loss2, ref2, atol=2e-5, rtol=1e-5), (loss2, ref2)

    # Default sizing with ragged N (single partial tile) + bf16 inputs.
    yp3 = jax.random.normal(k5, (100, 64), dtype=jnp.bfloat16)
    yt3 = jax.random.normal(k6, (100, 64), dtype=jnp.bfloat16)
    loss3 = cos_sim_loss(yp3, yt3)
    jax.block_until_ready(loss3)
    ref3 = _reference(yp3, yt3)
    assert jnp.allclose(loss3, ref3, atol=2e-3, rtol=1e-3), (loss3, ref3)

    print("KERNEL_OK")
</pallas_src>

<mosaic_0001>
module attributes {stable_mosaic.version = 11 : i64} {
  func.func @_cos_sim_loss_kernel(%arg0: i32, %arg1: memref<1xi32, #tpu.memory_space<smem>>, %arg2: memref<8x32xf32, #tpu.memory_space<vmem>>, %arg3: memref<8x32xf32, #tpu.memory_space<vmem>>, %arg4: memref<8x128xf32, #tpu.memory_space<vmem>>) attributes {dimension_semantics = [#tpu.dimension_semantics<arbitrary>], iteration_bounds = array<i64: 1>, scalar_prefetch = 1 : i64, scratch_operands = 0 : i64, tpu.core_type = #tpu.core_type<tc>, window_params = [{transform_indices = @transform_0, window_bounds = array<i64: 8, 32>}, {transform_indices = @transform_1, window_bounds = array<i64: 8, 32>}, {pipeline_mode = #tpu.pipeline_mode<synchronous>, transform_indices = @transform_2, window_bounds = array<i64: 8, 128>}]} {
    %c0_i32 = arith.constant 0 : i32
    %0 = arith.cmpi eq, %arg0, %c0_i32 : i32
    %1 = arith.extui %0 : i1 to i32
    %c0_i32_0 = arith.constant 0 : i32
    %2 = arith.cmpi ne, %1, %c0_i32_0 : i32
    scf.if %2 {
      %cst_6 = arith.constant 0.000000e+00 : f32
      %13 = vector.broadcast %cst_6 : f32 to vector<8x128xf32>
      %c0_7 = arith.constant 0 : index
      %c0_8 = arith.constant 0 : index
      %14 = vector.load %arg4[%c0_7, %c0_8] : memref<8x128xf32, #tpu.memory_space<vmem>>, vector<8x128xf32>
      tpu.vector_store %arg4[%c0_7, %c0_8], %13 {strides = array<i32>} : memref<8x128xf32, #tpu.memory_space<vmem>>, vector<8x128xf32>,
    } else {
    }
    %c0 = arith.constant 0 : index
    %3 = memref.load %arg1[%c0] : memref<1xi32, #tpu.memory_space<smem>>
    %c8_i32 = arith.constant 8 : i32
    %4 = arith.muli %arg0, %c8_i32 : i32
    %c8_i32_1 = arith.constant 8 : i32
    %5 = arith.addi %4, %c8_i32_1 : i32
    %6 = arith.cmpi sle, %5, %3 : i32
    %7 = arith.extui %6 : i1 to i32
    %cst = arith.constant 0.000000e+00 : f32
    %c0_i32_2 = arith.constant 0 : i32
    %8 = arith.cmpi ne, %7, %c0_i32_2 : i32
    scf.if %8 {
      %c0_6 = arith.constant 0 : index
      %c0_7 = arith.constant 0 : index
      %13 = vector.load %arg4[%c0_6, %c0_7] : memref<8x128xf32, #tpu.memory_space<vmem>>, vector<8x128xf32>
      %c0_i32_8 = arith.constant 0 : i32
      %c8_i32_9 = arith.constant 8 : i32
      %14 = arith.muli %c0_i32_8, %c8_i32_9 : i32
      %15 = tpu.assume_multiple %14, 8 : i32
      %16 = arith.index_cast %15 : i32 to index
      %c0_10 = arith.constant 0 : index
      %17 = vector.load %arg2[%16, %c0_10] : memref<8x32xf32, #tpu.memory_space<vmem>>, vector<8x32xf32>
      %18 = arith.index_cast %15 : i32 to index
      %c0_11 = arith.constant 0 : index
      %19 = vector.load %arg3[%18, %c0_11] : memref<8x32xf32, #tpu.memory_space<vmem>>, vector<8x32xf32>
      %20 = arith.mulf %17, %19 : vector<8x32xf32>
      %cst_12 = arith.constant dense<0.000000e+00> : vector<8xf32>
      %21 = vector.multi_reduction <add>, %20, %cst_12 [1] : vector<8x32xf32> to vector<8xf32>
      %22 = vector.shape_cast %21 : vector<8xf32> to vector<8x1xf32>
      %23 = arith.mulf %17, %17 : vector<8x32xf32>
      %cst_13 = arith.constant dense<0.000000e+00> : vector<8xf32>
      %24 = vector.multi_reduction <add>, %23, %cst_13 [1] : vector<8x32xf32> to vector<8xf32>
      %25 = vector.shape_cast %24 : vector<8xf32> to vector<8x1xf32>
      %cst_14 = arith.constant 9.99999996E-13 : f32
      %26 = vector.broadcast %cst_14 : f32 to vector<8x1xf32>
      %27 = arith.addf %25, %26 : vector<8x1xf32>
      %28 = arith.mulf %19, %19 : vector<8x32xf32>
      %cst_15 = arith.constant dense<0.000000e+00> : vector<8xf32>
      %29 = vector.multi_reduction <add>, %28, %cst_15 [1] : vector<8x32xf32> to vector<8xf32>
      %30 = vector.shape_cast %29 : vector<8xf32> to vector<8x1xf32>
      %cst_16 = arith.constant 9.99999996E-13 : f32
      %31 = vector.broadcast %cst_16 : f32 to vector<8x1xf32>
      %32 = arith.addf %30, %31 : vector<8x1xf32>
      %33 = arith.mulf %27, %32 : vector<8x1xf32>
      %34 = math.rsqrt %33 : vector<8x1xf32>
      %35 = arith.mulf %22, %34 : vector<8x1xf32>
      %cst_17 = arith.constant 1.000000e+00 : f32
      %36 = vector.broadcast %cst_17 : f32 to vector<8x1xf32>
      %37 = arith.subf %36, %35 : vector<8x1xf32>
      %38 = vector.shape_cast %37 : vector<8x1xf32> to vector<1x8x1xf32>
      %cst_18 = arith.constant dense<0.000000e+00> : vector<1xf32>
      %39 = vector.multi_reduction <add>, %38, %cst_18 [1, 2] : vector<1x8x1xf32> to vector<1xf32>
      %40 = vector.shape_cast %39 : vector<1xf32> to vector<1x1x1xf32>
      %41 = vector.extract %40[0, 0, 0] : f32 from vector<1x1x1xf32>
      %42 = arith.addf %cst, %41 : f32
      %c1_i32 = arith.constant 1 : i32
      %43 = vector.broadcast %42 : f32 to vector<8x128xf32>
      %44 = arith.addf %13, %43 : vector<8x128xf32>
      %c0_19 = arith.constant 0 : index
      %c0_20 = arith.constant 0 : index
      %45 = vector.load %arg4[%c0_19, %c0_20] : memref<8x128xf32, #tpu.memory_space<vmem>>, vector<8x128xf32>
      tpu.vector_store %arg4[%c0_19, %c0_20], %44 {strides = array<i32>} : memref<8x128xf32, #tpu.memory_space<vmem>>, vector<8x128xf32>,
    } else {
    }
    %c8_i32_3 = arith.constant 8 : i32
    %9 = arith.addi %4, %c8_i32_3 : i32
    %10 = arith.cmpi sgt, %9, %3 : i32
    %11 = arith.extui %10 : i1 to i32
    %cst_4 = arith.constant 0.000000e+00 : f32
    %c0_i32_5 = arith.constant 0 : i32
    %12 = arith.cmpi ne, %11, %c0_i32_5 : i32
    scf.if %12 {
      %c0_6 = arith.constant 0 : index
      %c0_7 = arith.constant 0 : index
      %13 = vector.load %arg4[%c0_6, %c0_7] : memref<8x128xf32, #tpu.memory_space<vmem>>, vector<8x128xf32>
      %c0_i32_8 = arith.constant 0 : i32
      %c8_i32_9 = arith.constant 8 : i32
      %14 = arith.muli %c0_i32_8, %c8_i32_9 : i32
      %15 = tpu.assume_multiple %14, 8 : i32
      %16 = arith.index_cast %15 : i32 to index
      %c0_10 = arith.constant 0 : index
      %17 = vector.load %arg2[%16, %c0_10] : memref<8x32xf32, #tpu.memory_space<vmem>>, vector<8x32xf32>
      %18 = arith.index_cast %15 : i32 to index
      %c0_11 = arith.constant 0 : index
      %19 = vector.load %arg3[%18, %c0_11] : memref<8x32xf32, #tpu.memory_space<vmem>>, vector<8x32xf32>
      %20 = arith.mulf %17, %19 : vector<8x32xf32>
      %cst_12 = arith.constant dense<0.000000e+00> : vector<8xf32>
      %21 = vector.multi_reduction <add>, %20, %cst_12 [1] : vector<8x32xf32> to vector<8xf32>
      %22 = vector.shape_cast %21 : vector<8xf32> to vector<8x1xf32>
      %23 = arith.mulf %17, %17 : vector<8x32xf32>
      %cst_13 = arith.constant dense<0.000000e+00> : vector<8xf32>
      %24 = vector.multi_reduction <add>, %23, %cst_13 [1] : vector<8x32xf32> to vector<8xf32>
      %25 = vector.shape_cast %24 : vector<8xf32> to vector<8x1xf32>
      %cst_14 = arith.constant 9.99999996E-13 : f32
      %26 = vector.broadcast %cst_14 : f32 to vector<8x1xf32>
      %27 = arith.addf %25, %26 : vector<8x1xf32>
      %28 = arith.mulf %19, %19 : vector<8x32xf32>
      %cst_15 = arith.constant dense<0.000000e+00> : vector<8xf32>
      %29 = vector.multi_reduction <add>, %28, %cst_15 [1] : vector<8x32xf32> to vector<8xf32>
      %30 = vector.shape_cast %29 : vector<8xf32> to vector<8x1xf32>
      %cst_16 = arith.constant 9.99999996E-13 : f32
      %31 = vector.broadcast %cst_16 : f32 to vector<8x1xf32>
      %32 = arith.addf %30, %31 : vector<8x1xf32>
      %33 = arith.mulf %27, %32 : vector<8x1xf32>
      %34 = math.rsqrt %33 : vector<8x1xf32>
      %35 = arith.mulf %22, %34 : vector<8x1xf32>
      %cst_17 = arith.constant 1.000000e+00 : f32
      %36 = vector.broadcast %cst_17 : f32 to vector<8x1xf32>
      %37 = arith.subf %36, %35 : vector<8x1xf32>
      %38 = arith.addi %4, %15 : i32
      %39 = tpu.iota {dimensions = array<i32: 0>} : vector<8x1xi32>
      %40 = vector.broadcast %38 : i32 to vector<8x1xi32>
      %41 = arith.addi %40, %39 : vector<8x1xi32>
      %42 = vector.broadcast %3 : i32 to vector<8x1xi32>
      %43 = arith.cmpi slt, %41, %42 : vector<8x1xi32>
      %cst_18 = arith.constant 0.000000e+00 : f32
      %44 = vector.broadcast %cst_18 : f32 to vector<8x1xf32>
      %45 = arith.select %43, %37, %44 : vector<8x1xi1>, vector<8x1xf32>
      %46 = vector.shape_cast %45 : vector<8x1xf32> to vector<1x8x1xf32>
      %cst_19 = arith.constant dense<0.000000e+00> : vector<1xf32>
      %47 = vector.multi_reduction <add>, %46, %cst_19 [1, 2] : vector<1x8x1xf32> to vector<1xf32>
      %48 = vector.shape_cast %47 : vector<1xf32> to vector<1x1x1xf32>
      %49 = vector.extract %48[0, 0, 0] : f32 from vector<1x1x1xf32>
      %50 = arith.addf %cst_4, %49 : f32
      %c1_i32 = arith.constant 1 : i32
      %51 = vector.broadcast %50 : f32 to vector<8x128xf32>
      %52 = arith.addf %13, %51 : vector<8x128xf32>
      %c0_20 = arith.constant 0 : index
      %c0_21 = arith.constant 0 : index
      %53 = vector.load %arg4[%c0_20, %c0_21] : memref<8x128xf32, #tpu.memory_space<vmem>>, vector<8x128xf32>
      tpu.vector_store %arg4[%c0_20, %c0_21], %52 {strides = array<i32>} : memref<8x128xf32, #tpu.memory_space<vmem>>, vector<8x128xf32>,
    } else {
    }
    return
  }
  func.func @transform_0(%arg0: i32, %arg1: memref<1xi32, #tpu.memory_space<smem>>) -> (i32, i32) {
    %c0_i32 = arith.constant 0 : i32
    %c0_i32_0 = arith.constant 0 : i32
    return %arg0, %c0_i32 : i32, i32
  }
  func.func @transform_1(%arg0: i32, %arg1: memref<1xi32, #tpu.memory_space<smem>>) -> (i32, i32) {
    %c0_i32 = arith.constant 0 : i32
    %c0_i32_0 = arith.constant 0 : i32
    return %arg0, %c0_i32 : i32, i32
  }
  func.func @transform_2(%arg0: i32, %arg1: memref<1xi32, #tpu.memory_space<smem>>) -> (i32, i32) {
    %c0_i32 = arith.constant 0 : i32
    %c0_i32_0 = arith.constant 0 : i32
    %c0_i32_1 = arith.constant 0 : i32
    return %c0_i32, %c0_i32_0 : i32, i32
  }
}

</mosaic_0001>

<bundles_post_ra>
// kernel: tpu_custom_call.1
= control target key start
LH: loop header
LB: loop body
LE: loop exit
PB: predicated region body
PF: predicated region fallthrough
CT: control target
= control target key end

     0   :  { %9 = vsyncpa [#allocation5], 0  ;;  %s276_s0 = inlined_call_operand.<no memory space> [shape: s32[1], index: 0, kind: input, shape index: {}]   ;;  %s277_s1 = inlined_call_operand.hbm [shape: f32[8,32], index: 1, kind: input, shape index: {}]   ;;  %s278_s2 = inlined_call_operand.hbm [shape: f32[8,32], index: 2, kind: input, shape index: {}]   ;;  %s279_s3 = inlined_call_operand.hbm [shape: f32[8,128], index: 3, kind: output, shape index: {}]  }
   0x1   :  { %10 = vsyncpa [#allocation8], 0 }
   0x2   :  { %11 = vsyncpa [#allocation6], 0  ;;  %s234_s12 = smov [#allocation4]   ;;  %s235_s14 = smov [#allocation7]  }
   0x3   :  { %s18_s13 = sshll.u32 %s234_s12, 4  ;;  %s28_s15 = sshll.u32 %s235_s14, 4  ;;  %s19_s13 = int_to_ptr.vmem [resolvable:$true] %s18_s13  ;;  %s29_s15 = int_to_ptr.vmem [resolvable:$true] %s28_s15 }
   0x4   :  { %s176_s16 = scalar_lea.vmem %s19_s13, 128  ;;  %p181_p1 = scmp.lt.s32.totalorder %s19_s13, %s19_s13 }
   0x5   :  { %p177_p0 = scmp.ne.s32.totalorder %s19_s13, %s176_s16  ;;  %p182_p2 = scmp.lt.s32.totalorder %s176_s16, %s176_s16 }
   0x7   :  { %p183_p3 = por %p182_p2, %p181_p1 }
   0x9   :  { %p184_p4 = pnand %p183_p3, %p177_p0 }
   0xb   :  { %187 = shalt.err (!%p184_p4)
}
   0xc   :  { %21 = dma.hbm_to_vmem [thread:$0]  %s277_s1, 128, %s19_s13, [#allocation5]  }
   0xd   :  { %s196_s19 = scalar_lea.vmem %s29_s15, 128  ;;  %p201_p6 = scmp.lt.s32.totalorder %s29_s15, %s29_s15 }
   0xe   :  { %p197_p5 = scmp.ne.s32.totalorder %s29_s15, %s196_s19  ;;  %p202_p7 = scmp.lt.s32.totalorder %s196_s19, %s196_s19 }
  0x10   :  { %p203_p8 = por %p202_p7, %p201_p6 }
  0x12   :  { %p204_p9 = pnand %p203_p8, %p197_p5 }
  0x14   :  { %207 = shalt.err (!%p204_p9)
}
  0x15   :  { %31 = dma.hbm_to_vmem [thread:$0]  %s278_s2, 128, %s29_s15, [#allocation8]  }
  0x16   :  { %228 = dma.done.wait [#allocation5], 128  }
  0x17   :  { %229 = vsyncadd [#allocation5], 4294967168 }
  0x18   :  { %230 = dma.done.wait [#allocation8], 128  }
  0x19   :  { %231 = vsyncadd [#allocation8], 4294967168  ;;  %v236_v0 = vmov 0.0   ;;  %p153_p10 = scmp.lt.s32.totalorder %s276_s0, 8 }
  0x1a   :  { %42 = vst [vmem:[#allocation9] sm:$0xff] %v236_v0 }
  0x1b   :  { %49 = sbr.rel (%p153_p10) target bundleno = 405 (0x195), region = 25 }
  0x20   :  { %v51_v1 = vld [vmem:[#allocation4] sm:$0xff]  ;;  %vm54_vm0 = vcmask 261120   ;;  %v52_v2 = vld [vmem:[#allocation7] sm:$0xff]  ;;  %vm72_vm1 = vcmask 7168  }
  0x21   :  { %v58_v3 = vmul.f32 %v51_v1, %v51_v1  ;;  %v63_v4 = vmul.f32 %v52_v2, %v52_v2  ;;  %v53_v5 = vmul.f32 %v52_v2, %v51_v1  ;;  %v50_v26 = vld [vmem:[#allocation9] sm:$0xff] }
  0x23   :  { %v59_v6 = vsel %vm54_vm0, %v58_v3, 0.0  ;;  %v55_v7 = vsel %vm54_vm0, %v53_v5, 0.0  ;;  %v64_v8 = vsel %vm54_vm0, %v63_v4, 0.0 }
  0x24   :  { %60 = vadd.xlane.f32.xlu0 %v59_v6  ;;  %56 = vadd.xlane.f32.xlu1 %v55_v7 }
  0x28   :  { %65 = vadd.xlane.f32.xlu0 %v64_v8 }
  0xad   :  { %v61_v9 = vpop.xlane.xlu0 %60  ;;  %v57_v14 = vpop.xlane.xlu1 %56 }
  0xae   :  { %v62_v11 = vadd.f32 1e-12, %v61_v9 }
  0xb1   :  { %v66_v10 = vpop.xlane.xlu0 %65 }
  0xb2   :  { %v67_v12 = vadd.f32 1e-12, %v66_v10 }
  0xb4   :  { %v68_v13 = vmul.f32 %v67_v12, %v62_v11 }
  0xb6   :  { %164 = vrsqrt.f32 %v68_v13 }
  0xc3   :  { %v165_v15 = vpop.eup %164 }
  0xc4   :  { %v70_v16 = vmul.f32 %v165_v15, %v57_v14 }
  0xc6   :  { %v71_v17 = vsub.f32 1.0, %v70_v16 }
  0xc8   :  { %v73_v18 = vsel %vm72_vm1, %v71_v17, 0.0 }
  0xc9   :  { %74 = vadd.xlane.f32.xlu1 %v73_v18 }
 0x152   :  { %v75_v19 = vpop.xlane.xlu1 %74 }
 0x153   :  { %v76_v20 = vrot.slane %v75_v19, 4 }
 0x155   :  { %v77_v21 = vadd.f32 %v76_v20, %v75_v19 }
 0x157   :  { %v78_v22 = vrot.slane %v77_v21, 2 }
 0x159   :  { %v79_v23 = vadd.f32 %v78_v22, %v77_v21 }
 0x15b   :  { %v80_v24 = vrot.slane %v79_v23, 1 }
 0x15d   :  { %v81_v25 = vadd.f32 %v80_v24, %v79_v23 }
 0x15f   :  { %156 = vpush %v81_v25 }
 0x190   :  { %s157_s1 = spop %156 }
 0x191   :  { %v84_v27 = vstv %s157_s1 }
 0x192   :  { %v85_v28 = vadd.f32 %v84_v27, %v50_v26 }
 0x194   :  { %86 = vst [vmem:[#allocation9] sm:$0xff] %v85_v28 }
 0x195 PF:  { %p155_p11 = scmp.ge.s32.totalorder %s276_s0, 8 }
 0x197   :  { %90 = sbr.rel (%p155_p11) target bundleno = 786 (0x312), region = 29 }
 0x19c   :  { %v92_v29 = vld [vmem:[#allocation4] sm:$0xff]  ;;  %vm95_vm2 = vcmask 261120   ;;  %v93_v30 = vld [vmem:[#allocation7] sm:$0xff]  ;;  %v114_v42 = vlaneseq  ;;  %v118_v45 = vstv %s276_s0  ;;  %vm121_vm4 = vcmask 7168   ;;  %v91_v58 = vld [vmem:[#allocation9] sm:$0xff] }
 0x19d   :  { %v99_v31 = vmul.f32 %v92_v29, %v92_v29  ;;  %v104_v32 = vmul.f32 %v93_v30, %v93_v30  ;;  %v94_v33 = vmul.f32 %v93_v30, %v92_v29 }
 0x19e   :  { %v115_v44 = vshrl.u32 %v114_v42, 7 }
 0x19f   :  { %v100_v34 = vsel %vm95_vm2, %v99_v31, 0.0  ;;  %v96_v35 = vsel %vm95_vm2, %v94_v33, 0.0  ;;  %v105_v36 = vsel %vm95_vm2, %v104_v32, 0.0 }
 0x1a0   :  { %101 = vadd.xlane.f32.xlu0 %v100_v34  ;;  %97 = vadd.xlane.f32.xlu1 %v96_v35  ;;  %vm119_vm3 = vcmp.lt.s32.totalorder %v115_v44, %v118_v45 }
 0x1a4   :  { %106 = vadd.xlane.f32.xlu0 %v105_v36 }
 0x229   :  { %v102_v37 = vpop.xlane.xlu0 %101  ;;  %v98_v43 = vpop.xlane.xlu1 %97 }
 0x22a   :  { %v103_v39 = vadd.f32 1e-12, %v102_v37 }
 0x22d   :  { %v107_v38 = vpop.xlane.xlu0 %106 }
 0x22e   :  { %v108_v40 = vadd.f32 1e-12, %v107_v38 }
 0x230   :  { %v109_v41 = vmul.f32 %v108_v40, %v103_v39 }
 0x232   :  { %166 = vrsqrt.f32 %v109_v41 }
 0x23f   :  { %v167_v46 = vpop.eup %166 }
 0x240   :  { %v111_v47 = vmul.f32 %v167_v46, %v98_v43 }
 0x242   :  { %v112_v48 = vsub.f32 1.0, %v111_v47 }
 0x244   :  { %v120_v49 = vsel %vm119_vm3, %v112_v48, 0.0 }
 0x245   :  { %v122_v50 = vsel %vm121_vm4, %v120_v49, 0.0 }
 0x246   :  { %123 = vadd.xlane.f32.xlu1 %v122_v50 }
 0x2cf   :  { %v124_v51 = vpop.xlane.xlu1 %123 }
 0x2d0   :  { %v125_v52 = vrot.slane %v124_v51, 4 }
 0x2d2   :  { %v126_v53 = vadd.f32 %v125_v52, %v124_v51 }
 0x2d4   :  { %v127_v54 = vrot.slane %v126_v53, 2 }
 0x2d6   :  { %v128_v55 = vadd.f32 %v127_v54, %v126_v53 }
 0x2d8   :  { %v129_v56 = vrot.slane %v128_v55, 1 }
 0x2da   :  { %v130_v57 = vadd.f32 %v129_v56, %v128_v55 }
 0x2dc   :  { %158 = vpush %v130_v57 }
 0x30d   :  { %s159_s27 = spop %158 }
 0x30e   :  { %v133_v59 = vstv %s159_s27 }
 0x30f   :  { %v134_v60 = vadd.f32 %v133_v59, %v91_v58 }
 0x311   :  { %135 = vst [vmem:[#allocation9] sm:$0xff] %v134_v60 }
 0x312 PF:  { %s237_s0 = smov [#allocation9]  }
 0x313   :  { %s142_s28 = sshll.u32 %s237_s0, 4  ;;  %s143_s28 = int_to_ptr.vmem [resolvable:$true] %s142_s28 }
 0x314   :  { %s208_s29 = scalar_lea.vmem %s143_s28, 128  ;;  %p213_p13 = scmp.lt.s32.totalorder %s143_s28, %s143_s28 }
 0x315   :  { %p209_p12 = scmp.ne.s32.totalorder %s143_s28, %s208_s29  ;;  %p214_p0 = scmp.lt.s32.totalorder %s208_s29, %s208_s29 }
 0x317   :  { %p215_p1 = por %p214_p0, %p213_p13 }
 0x319   :  { %p216_p2 = pnand %p215_p1, %p209_p12 }
 0x31b   :  { %219 = shalt.err (!%p216_p2)
}
 0x31c   :  { %145 = dma.vmem_to_hbm [thread:$0]  %s143_s28, 128, %s279_s3, [#allocation6]  }
 0x31d   :  { %232 = dma.done.wait [#allocation6], 128  }
 0x31e   :  { %233 = vsyncadd [#allocation6], 4294967168 }
 0x31f   :  { %149 = vsyncpa [#allocation5], 1 }
 0x320   :  { %150 = vsyncpa [#allocation8], 1 }
 0x321   :  { %151 = vsyncpa [#allocation6], 1 }

</bundles_post_ra>
